<compile_context>
chip_gen: v7x
topology: tpu7x:2x2x1
jax: 0.10.0
libtpu: 0.0.40
codegen_flags: <defaults>
</compile_context>

<pallas_src>
import functools

import jax
import jax.numpy as jnp
from jax import lax
from jax.experimental import pallas as pl
from jax.experimental.pallas import tpu as pltpu


def pconv_kernel(kmat_ref, masks_ref, x_ref, o_ref, xcat_ref, *,
                 width, hw, dc, bblk):
    """One grid step = BBLK batch elements, conv channels only.

    kmat_ref  : (DC, 9*DC)      folded conv weight, tap-major columns
    masks_ref : (9, HW)         precomputed in-bounds mask per tap
    x_ref     : (BBLK, DC, HW)  conv channels only (aliased with the output)
    o_ref     : (BBLK, DC, HW)
    xcat_ref  : (9*DC, BBLK*HW) VMEM scratch holding the 9 shifted copies
    """
    m_all = masks_ref[...]                            # (9, HW), loaded once

    for b in range(bblk):
        x1 = x_ref[b]                                 # (DC, HW)
        t = 0
        for dy in (-1, 0, 1):
            for dx in (-1, 0, 1):
                off = dy * width + dx                 # flat pixel offset
                if off == 0:
                    s = x1
                else:
                    # s[p] = x1[(p + off) mod HW]  (XLU lane rotate)
                    s = pltpu.roll(x1, (-off) % hw, axis=1)
                    # zero circular-wrap / out-of-image positions
                    s = s * m_all[t:t + 1, :]
                # aligned sublane/lane-range store into the scratch
                xcat_ref[t * dc:(t + 1) * dc, b * hw:(b + 1) * hw] = s
                t += 1

    # all 9 taps x DC channels x BBLK images folded into a single MXU matmul
    y = jnp.dot(kmat_ref[...], xcat_ref[...],
                preferred_element_type=jnp.float32)   # (DC, BBLK*HW)

    for b in range(bblk):
        o_ref[b] = y[:, b * hw:(b + 1) * hw].astype(o_ref.dtype)


def _tap_masks(H, W, dtype):
    """(9, H*W) {0,1} masks: tap (dy, dx) at pixel p lands inside the image."""
    p = jnp.arange(H * W, dtype=jnp.int32)
    h, w = p // W, p % W
    rows = []
    for dy in (-1, 0, 1):
        for dx in (-1, 0, 1):
            ok = (h + dy >= 0) & (h + dy < H) & (w + dx >= 0) & (w + dx < W)
            rows.append(ok.astype(dtype))
    return jnp.stack(rows, axis=0)


def _pick_batch_block(bs, max_bblk=8):
    """Largest BBLK dividing bs that keeps >=2 grid steps (feeds both v7x TCs)."""
    best = 1
    for d in range(1, min(bs, max_bblk) + 1):
        if bs % d == 0 and bs // d >= 2:
            best = d
    return best


def _pconv_impl(x, weight_oihw):
    """x: (B, C, H, W) NCHW (PyTorch layout); weight: (DC, DC, 3, 3) OIHW."""
    bs, C, H, W = x.shape
    DC = weight_oihw.shape[0]
    HW = H * W
    bblk = _pick_batch_block(bs)

    x_flat = x.reshape(bs, C, HW)                     # lane-dense pixel axis
    # fold taps: kmat[co, (kh*3+kw)*DC + ci] = weight[co, ci, kh, kw]
    kmat = jnp.transpose(weight_oihw, (0, 2, 3, 1)).reshape(DC, 9 * DC)
    masks = _tap_masks(H, W, x.dtype)                 # (9, HW)

    kernel = functools.partial(pconv_kernel, width=W, hw=HW, dc=DC, bblk=bblk)

    # TODO(synk): for production image sizes add an H-strip grid axis with a
    # 1-row halo so blocks stay well under v7x's 64 MiB VMEM and provide a
    # second parallel axis; unnecessary at these shapes.
    out_flat = pl.pallas_call(
        kernel,
        out_shape=jax.ShapeDtypeStruct((bs, C, HW), x.dtype),
        grid_spec=pltpu.PrefetchScalarGridSpec(
            num_scalar_prefetch=0,
            grid=(bs // bblk,),
            in_specs=[
                pl.BlockSpec((DC, 9 * DC), lambda g: (0, 0)),
                pl.BlockSpec((9, HW), lambda g: (0, 0)),
                # only the first DC channels are ever moved on-chip
                pl.BlockSpec((bblk, DC, HW), lambda g: (g, 0, 0)),
            ],
            # only the first DC channels are written back; the untouched
            # channels stay in place in the aliased HBM buffer
            out_specs=pl.BlockSpec((bblk, DC, HW), lambda g: (g, 0, 0)),
            scratch_shapes=[pltpu.VMEM((9 * DC, bblk * HW), x.dtype)],
        ),
        input_output_aliases={2: 0},                  # x_flat <-> output
        compiler_params=pltpu.CompilerParams(
            dimension_semantics=("parallel",)),
        cost_estimate=pl.CostEstimate(
            flops=2 * bs * DC * (9 * DC) * HW,
            transcendentals=0,
            bytes_accessed=2 * bs * DC * HW * x.dtype.itemsize),
    )(kmat, masks, x_flat)

    return out_flat.reshape(bs, C, H, W)


# donate x so the in-place alias does not force a defensive copy in XLA
pconv_pallas = jax.jit(_pconv_impl, donate_argnums=(0,))


def pconv_reference(x, weight_oihw, dim_conv):
    """Pure-JAX reference matching the PyTorch PConv.forward (NCHW)."""
    x1 = x[:, :dim_conv]
    x2 = x[:, dim_conv:]
    y1 = lax.conv_general_dilated(
        x1, weight_oihw, window_strides=(1, 1), padding=((1, 1), (1, 1)),
        dimension_numbers=("NCHW", "OIHW", "NCHW"),
        precision=lax.Precision.HIGHEST)
    return jnp.concatenate([y1, x2], axis=1)


if __name__ == "__main__":
    bs, dim, H, W = 2, 32, 16, 16
    DC = dim // 4                                     # dim_conv = 8

    key = jax.random.PRNGKey(0)
    kx, kw = jax.random.split(key)
    x = jax.random.normal(kx, (bs, dim, H, W), jnp.float32)
    weight = jax.random.normal(kw, (DC, DC, 3, 3), jnp.float32) * 0.2

    # reference first: x is donated (invalidated) by the pallas call below
    ref = jax.block_until_ready(pconv_reference(x, weight, DC))
    out = jax.block_until_ready(pconv_pallas(x, weight))

    assert out.shape == (bs, dim, H, W)
    max_err = float(jnp.max(jnp.abs(out - ref)))
    assert jnp.allclose(out, ref, atol=2e-3, rtol=2e-3), max_err
    # untouched channels must pass through bit-exactly (via the alias)
    assert bool(jnp.all(out[:, DC:] == ref[:, DC:]))
    print("KERNEL_OK")
</pallas_src>

<mosaic_0001>
module attributes {stable_mosaic.version = 11 : i64} {
  func.func @pconv_kernel(%arg0: i32, %arg1: memref<8x72xf32, #tpu.memory_space<vmem>>, %arg2: memref<9x256xf32, #tpu.memory_space<vmem>>, %arg3: memref<1x8x256xf32, #tpu.memory_space<vmem>>, %arg4: memref<1x8x256xf32, #tpu.memory_space<vmem>>, %arg5: memref<72x256xf32, #tpu.memory_space<vmem>>) attributes {dimension_semantics = [#tpu.dimension_semantics<parallel>], iteration_bounds = array<i64: 2>, scalar_prefetch = 0 : i64, scratch_operands = 1 : i64, tpu.core_type = #tpu.core_type<tc>, window_params = [{pipeline_mode = #tpu.pipeline_mode<synchronous>, transform_indices = @transform_0, window_bounds = array<i64: 8, 72>}, {pipeline_mode = #tpu.pipeline_mode<synchronous>, transform_indices = @transform_1, window_bounds = array<i64: 9, 256>}, {transform_indices = @transform_2, window_bounds = array<i64: 1, 8, 256>}, {transform_indices = @transform_3, window_bounds = array<i64: 1, 8, 256>}]} {
    %c0 = arith.constant 0 : index
    %c0_0 = arith.constant 0 : index
    %0 = vector.load %arg2[%c0, %c0_0] : memref<9x256xf32, #tpu.memory_space<vmem>>, vector<9x256xf32>
    %c0_1 = arith.constant 0 : index
    %c0_2 = arith.constant 0 : index
    %c0_3 = arith.constant 0 : index
    %1 = vector.load %arg3[%c0_1, %c0_2, %c0_3] : memref<1x8x256xf32, #tpu.memory_space<vmem>>, vector<1x8x256xf32>
    %2 = vector.shape_cast %1 : vector<1x8x256xf32> to vector<8x256xf32>
    %c17_i32 = arith.constant 17 : i32
    %3 = tpu.dynamic_rotate %2 by %c17_i32 dim 1 : vector<8x256xf32>, i32 -> vector<8x256xf32>
    %4 = vector.extract_strided_slice %0 {offsets = [0, 0], sizes = [1, 256], strides = [1, 1]} : vector<9x256xf32> to vector<1x256xf32>
    %5 = vector.broadcast %4 : vector<1x256xf32> to vector<8x256xf32>
    %6 = arith.mulf %3, %5 : vector<8x256xf32>
    %c0_4 = arith.constant 0 : index
    %c0_5 = arith.constant 0 : index
    %7 = vector.load %arg5[%c0_4, %c0_5] : memref<72x256xf32, #tpu.memory_space<vmem>>, vector<8x256xf32>
    tpu.vector_store %arg5[%c0_4, %c0_5], %6 {strides = array<i32>} : memref<72x256xf32, #tpu.memory_space<vmem>>, vector<8x256xf32>,
    %c16_i32 = arith.constant 16 : i32
    %8 = tpu.dynamic_rotate %2 by %c16_i32 dim 1 : vector<8x256xf32>, i32 -> vector<8x256xf32>
    %9 = vector.extract_strided_slice %0 {offsets = [1, 0], sizes = [1, 256], strides = [1, 1]} : vector<9x256xf32> to vector<1x256xf32>
    %10 = vector.broadcast %9 : vector<1x256xf32> to vector<8x256xf32>
    %11 = arith.mulf %8, %10 : vector<8x256xf32>
    %c8 = arith.constant 8 : index
    %c0_6 = arith.constant 0 : index
    %12 = vector.load %arg5[%c8, %c0_6] : memref<72x256xf32, #tpu.memory_space<vmem>>, vector<8x256xf32>
    tpu.vector_store %arg5[%c8, %c0_6], %11 {strides = array<i32>} : memref<72x256xf32, #tpu.memory_space<vmem>>, vector<8x256xf32>,
    %c15_i32 = arith.constant 15 : i32
    %13 = tpu.dynamic_rotate %2 by %c15_i32 dim 1 : vector<8x256xf32>, i32 -> vector<8x256xf32>
    %14 = vector.extract_strided_slice %0 {offsets = [2, 0], sizes = [1, 256], strides = [1, 1]} : vector<9x256xf32> to vector<1x256xf32>
    %15 = vector.broadcast %14 : vector<1x256xf32> to vector<8x256xf32>
    %16 = arith.mulf %13, %15 : vector<8x256xf32>
    %c16 = arith.constant 16 : index
    %c0_7 = arith.constant 0 : index
    %17 = vector.load %arg5[%c16, %c0_7] : memref<72x256xf32, #tpu.memory_space<vmem>>, vector<8x256xf32>
    tpu.vector_store %arg5[%c16, %c0_7], %16 {strides = array<i32>} : memref<72x256xf32, #tpu.memory_space<vmem>>, vector<8x256xf32>,
    %c1_i32 = arith.constant 1 : i32
    %18 = tpu.dynamic_rotate %2 by %c1_i32 dim 1 : vector<8x256xf32>, i32 -> vector<8x256xf32>
    %19 = vector.extract_strided_slice %0 {offsets = [3, 0], sizes = [1, 256], strides = [1, 1]} : vector<9x256xf32> to vector<1x256xf32>
    %20 = vector.broadcast %19 : vector<1x256xf32> to vector<8x256xf32>
    %21 = arith.mulf %18, %20 : vector<8x256xf32>
    %c24 = arith.constant 24 : index
    %c0_8 = arith.constant 0 : index
    %22 = vector.load %arg5[%c24, %c0_8] : memref<72x256xf32, #tpu.memory_space<vmem>>, vector<8x256xf32>
    tpu.vector_store %arg5[%c24, %c0_8], %21 {strides = array<i32>} : memref<72x256xf32, #tpu.memory_space<vmem>>, vector<8x256xf32>,
    %c32 = arith.constant 32 : index
    %c0_9 = arith.constant 0 : index
    %23 = vector.load %arg5[%c32, %c0_9] : memref<72x256xf32, #tpu.memory_space<vmem>>, vector<8x256xf32>
    tpu.vector_store %arg5[%c32, %c0_9], %2 {strides = array<i32>} : memref<72x256xf32, #tpu.memory_space<vmem>>, vector<8x256xf32>,
    %c255_i32 = arith.constant 255 : i32
    %24 = tpu.dynamic_rotate %2 by %c255_i32 dim 1 : vector<8x256xf32>, i32 -> vector<8x256xf32>
    %25 = vector.extract_strided_slice %0 {offsets = [5, 0], sizes = [1, 256], strides = [1, 1]} : vector<9x256xf32> to vector<1x256xf32>
    %26 = vector.broadcast %25 : vector<1x256xf32> to vector<8x256xf32>
    %27 = arith.mulf %24, %26 : vector<8x256xf32>
    %c40 = arith.constant 40 : index
    %c0_10 = arith.constant 0 : index
    %28 = vector.load %arg5[%c40, %c0_10] : memref<72x256xf32, #tpu.memory_space<vmem>>, vector<8x256xf32>
    tpu.vector_store %arg5[%c40, %c0_10], %27 {strides = array<i32>} : memref<72x256xf32, #tpu.memory_space<vmem>>, vector<8x256xf32>,
    %c241_i32 = arith.constant 241 : i32
    %29 = tpu.dynamic_rotate %2 by %c241_i32 dim 1 : vector<8x256xf32>, i32 -> vector<8x256xf32>
    %30 = vector.extract_strided_slice %0 {offsets = [6, 0], sizes = [1, 256], strides = [1, 1]} : vector<9x256xf32> to vector<1x256xf32>
    %31 = vector.broadcast %30 : vector<1x256xf32> to vector<8x256xf32>
    %32 = arith.mulf %29, %31 : vector<8x256xf32>
    %c48 = arith.constant 48 : index
    %c0_11 = arith.constant 0 : index
    %33 = vector.load %arg5[%c48, %c0_11] : memref<72x256xf32, #tpu.memory_space<vmem>>, vector<8x256xf32>
    tpu.vector_store %arg5[%c48, %c0_11], %32 {strides = array<i32>} : memref<72x256xf32, #tpu.memory_space<vmem>>, vector<8x256xf32>,
    %c240_i32 = arith.constant 240 : i32
    %34 = tpu.dynamic_rotate %2 by %c240_i32 dim 1 : vector<8x256xf32>, i32 -> vector<8x256xf32>
    %35 = vector.extract_strided_slice %0 {offsets = [7, 0], sizes = [1, 256], strides = [1, 1]} : vector<9x256xf32> to vector<1x256xf32>
    %36 = vector.broadcast %35 : vector<1x256xf32> to vector<8x256xf32>
    %37 = arith.mulf %34, %36 : vector<8x256xf32>
    %c56 = arith.constant 56 : index
    %c0_12 = arith.constant 0 : index
    %38 = vector.load %arg5[%c56, %c0_12] : memref<72x256xf32, #tpu.memory_space<vmem>>, vector<8x256xf32>
    tpu.vector_store %arg5[%c56, %c0_12], %37 {strides = array<i32>} : memref<72x256xf32, #tpu.memory_space<vmem>>, vector<8x256xf32>,
    %c239_i32 = arith.constant 239 : i32
    %39 = tpu.dynamic_rotate %2 by %c239_i32 dim 1 : vector<8x256xf32>, i32 -> vector<8x256xf32>
    %40 = vector.extract_strided_slice %0 {offsets = [8, 0], sizes = [1, 256], strides = [1, 1]} : vector<9x256xf32> to vector<1x256xf32>
    %41 = vector.broadcast %40 : vector<1x256xf32> to vector<8x256xf32>
    %42 = arith.mulf %39, %41 : vector<8x256xf32>
    %c64 = arith.constant 64 : index
    %c0_13 = arith.constant 0 : index
    %43 = vector.load %arg5[%c64, %c0_13] : memref<72x256xf32, #tpu.memory_space<vmem>>, vector<8x256xf32>
    tpu.vector_store %arg5[%c64, %c0_13], %42 {strides = array<i32>} : memref<72x256xf32, #tpu.memory_space<vmem>>, vector<8x256xf32>,
    %c0_14 = arith.constant 0 : index
    %c0_15 = arith.constant 0 : index
    %44 = vector.load %arg1[%c0_14, %c0_15] : memref<8x72xf32, #tpu.memory_space<vmem>>, vector<8x72xf32>
    %c0_16 = arith.constant 0 : index
    %c0_17 = arith.constant 0 : index
    %45 = vector.load %arg5[%c0_16, %c0_17] : memref<72x256xf32, #tpu.memory_space<vmem>>, vector<72x256xf32>
    %cst = arith.constant dense<0.000000e+00> : vector<8x256xf32>
    %46 = tpu.matmul %44, %45, %cst {dimension_numbers = #tpu.dot_dimension_numbers<[1], [0], [0], [1], [0, 0, 1, 1], [], []>} : vector<8x72xf32>, vector<72x256xf32>, vector<8x256xf32> -> vector<8x256xf32>
    %c0_18 = arith.constant 0 : index
    %c0_19 = arith.constant 0 : index
    %c0_20 = arith.constant 0 : index
    %47 = vector.load %arg4[%c0_18, %c0_19, %c0_20] : memref<1x8x256xf32, #tpu.memory_space<vmem>>, vector<1x8x256xf32>
    %48 = vector.shape_cast %47 : vector<1x8x256xf32> to vector<8x256xf32>
    %49 = vector.shape_cast %46 : vector<8x256xf32> to vector<1x8x256xf32>
    tpu.vector_store %arg4[%c0_18, %c0_19, %c0_20], %49 {strides = array<i32>} : memref<1x8x256xf32, #tpu.memory_space<vmem>>, vector<1x8x256xf32>,
    return
  }
  func.func @transform_0(%arg0: i32) -> (i32, i32) {
    %c0_i32 = arith.constant 0 : i32
    %c0_i32_0 = arith.constant 0 : i32
    %c0_i32_1 = arith.constant 0 : i32
    return %c0_i32, %c0_i32_0 : i32, i32
  }
  func.func @transform_1(%arg0: i32) -> (i32, i32) {
    %c0_i32 = arith.constant 0 : i32
    %c0_i32_0 = arith.constant 0 : i32
    %c0_i32_1 = arith.constant 0 : i32
    return %c0_i32, %c0_i32_0 : i32, i32
  }
  func.func @transform_2(%arg0: i32) -> (i32, i32, i32) {
    %c0_i32 = arith.constant 0 : i32
    %c0_i32_0 = arith.constant 0 : i32
    %c0_i32_1 = arith.constant 0 : i32
    return %arg0, %c0_i32, %c0_i32_0 : i32, i32, i32
  }
  func.func @transform_3(%arg0: i32) -> (i32, i32, i32) {
    %c0_i32 = arith.constant 0 : i32
    %c0_i32_0 = arith.constant 0 : i32
    %c0_i32_1 = arith.constant 0 : i32
    return %arg0, %c0_i32, %c0_i32_0 : i32, i32, i32
  }
}

</mosaic_0001>

<bundles_post_ra>
// kernel: _pconv_impl.1
= control target key start
LH: loop header
LB: loop body
LE: loop exit
PB: predicated region body
PF: predicated region fallthrough
CT: control target
= control target key end

     0   :  { %s570_s12 = smov 0   ;;  %s668_s0 = inlined_call_operand.vmem [shape: f32[8,72], index: 0, kind: input, shape index: {}]   ;;  %s669_s1 = inlined_call_operand.vmem [shape: f32[9,256], index: 1, kind: input, shape index: {}]   ;;  %s670_s2 = inlined_call_operand.vmem [shape: f32[2,32,256], index: 2, kind: input, shape index: {}, may-alias: {2,3}]   ;;  %s671_s3 = inlined_call_operand.vmem [shape: f32[2,32,256], index: 3, kind: output, shape index: {}, may-alias: {2,3}]  }
   0x1 LB: > { %s484_s13 = sadd.s32 4294967295, %s539_s12   ;;  %p488_p0 = scmp.ge.s32.totalorder %s539_s12, 1  ;;  %s539_s12 = sphi %s570_s12, %s13_s12  }
   0x2   : > { %p137_p1 = scmp.lt.s32.totalorder %s539_s12, 3 }
   0x4   : > { %p138_p2 = pnand %p488_p0, %p137_p1 }
   0x5   : > { %p161_p3 = scmp.lt.s32.totalorder (!%p138_p2), %s484_s13, 1  ;;  %s541_s18 = smov (!%p138_p2), 16   ;;  %v547_v2 = vmov (!%p138_p2), 0.0   ;;  %v181_v3 = vlaneseq (!%p138_p2)  ;;  %v615_v8 = vld [vmem:[%s669_s1] sm:$0xff] (!%p138_p2)  ;;  %v620_v9 = vld [vmem:[%s669_s1 + $0x8] sm:$0xff] (!%p138_p2)  ;;  %vm352_vm8 = vcmask (!%p138_p2), 588800  }
   0x6   : > { %141 = sbr.rel (%p138_p2) target bundleno = 381 (0x17d), region = 32  ;;  %s542_s19 = smov (!%p138_p2), 17   ;;  %420 = vmatprep.mubr.f32.mxu0 (!%p138_p2), %v547_v2 }
   0x7   : > { %s543_s20 = smov (!%p138_p2), 15   ;;  %s544_s21 = smov (!%p138_p2), 1   ;;  %v606_v4 = vshrl.u32 (!%p138_p2), %v181_v3, 7  ;;  %v608_v5 = vand.u32 (!%p138_p2), 127, %v181_v3 }
   0x8   : > { %s545_s22 = smov (!%p138_p2), 127   ;;  %s546_s23 = smov (!%p138_p2), 113  }
   0x9   : > { %s548_s24 = smov (!%p138_p2), 112   ;;  %s549_s25 = smov (!%p138_p2), 111   ;;  %v207_v6 = vsub.s32 (!%p138_p2), 1, %v606_v4  ;;  %v188_v7 = vsub.s32 (!%p138_p2), 0, %v606_v4  ;;  %vm202_vm0 = vcmp.lt.s32.totalorder (!%p138_p2), %v608_v5, 16  ;;  %vm183_vm1 = vcmp.lt.s32.totalorder (!%p138_p2), %v608_v5, 17 }
   0xa   : > { %v226_v18 = vsub.s32 (!%p138_p2), 2, %v606_v4  ;;  %v245_v19 = vsub.s32 (!%p138_p2), 3, %v606_v4  ;;  %vm221_vm2 = vcmp.lt.s32.totalorder (!%p138_p2), %v608_v5, 15  ;;  %vm240_vm3 = vcmp.lt.s32.totalorder (!%p138_p2), %v608_v5, 1 }
   0xb   : > { %v208_v12 = vrot.slane (!%p138_p2), %v615_v8, %v207_v6  ;;  %v189_v13 = vrot.slane (!%p138_p2), %v615_v8, %v188_v7  ;;  %v193_v14 = vrot.slane (!%p138_p2), %v620_v9, %v188_v7  ;;  %v212_v15 = vrot.slane (!%p138_p2), %v620_v9, %v207_v6 }
   0xc   : > { %v266_v32 = vsub.s32 (!%p138_p2), 5, %v606_v4  ;;  %v227_v33 = vrot.slane (!%p138_p2), %v615_v8, %v226_v18  ;;  %v231_v34 = vrot.slane (!%p138_p2), %v620_v9, %v226_v18  ;;  %v246_v35 = vrot.slane (!%p138_p2), %v615_v8, %v245_v19 }
   0xd   : > { %s673_s13 = smov (!%p161_p3, %s484_s13), 1  ;;  %v250_v36 = vrot.slane %v620_v9, %v245_v19  ;;  %vm261_vm4 = vcmp.lt.s32.totalorder %v608_v5, 127  ;;  %v285_v55 = vsub.s32 6, %v606_v4  ;;  %v304_v58 = vsub.s32 7, %v606_v4 }
   0xe   : > { %s498_s14 = sshll.u32 %s673_s13, 6  ;;  %v267_v43 = vrot.slane %v615_v8, %v266_v32  ;;  %v271_v44 = vrot.slane %v620_v9, %v266_v32  ;;  %vm280_vm5 = vcmp.lt.s32.totalorder %v608_v5, 113  ;;  %vm299_vm6 = vcmp.lt.s32.totalorder %v608_v5, 112 }
   0xf   : > { %s165_s17 = scalar_lea.vmem %s670_s2, %s498_s14  ;;  %v286_v63 = vrot.slane %v615_v8, %v285_v55  ;;  %v290_v2 = vrot.slane %v620_v9, %v285_v55  ;;  %v305_v3 = vrot.slane %v615_v8, %v304_v58  ;;  %v309_v4 = vrot.slane %v620_v9, %v304_v58  ;;  %s170_s11 = scalar_lea.vmem %s671_s3, %s498_s14 }
  0x10   : > { %v586_v0 = vld [vmem:[%s165_s17] sm:$0xff]  ;;  %v590_v1 = vld [vmem:[%s165_s17 + $0x8] sm:$0xff]  ;;  %vm318_vm7 = vcmp.lt.s32.totalorder %v608_v5, 111 }
  0x11   : > { %198 = vrot.lane.b32.xlu1 %v586_v0, %s541_s18  ;;  %177 = vrot.lane.b32.xlu0 %v586_v0, %s542_s19 }
  0x15   : > { %200 = vrot.lane.b32.xlu1 %v590_v1, %s541_s18  ;;  %179 = vrot.lane.b32.xlu0 %v590_v1, %s542_s19 }
  0x19   : > { %219 = vrot.lane.b32.xlu1 %v590_v1, %s543_s20  ;;  %217 = vrot.lane.b32.xlu0 %v586_v0, %s543_s20 }
  0x1d   : > { %238 = vrot.lane.b32.xlu1 %v590_v1, %s544_s21  ;;  %236 = vrot.lane.b32.xlu0 %v586_v0, %s544_s21 }
  0x21   : > { %259 = vrot.lane.b32.xlu1 %v590_v1, %s545_s22  ;;  %257 = vrot.lane.b32.xlu0 %v586_v0, %s545_s22 }
  0x25   : > { %278 = vrot.lane.b32.xlu1 %v590_v1, %s546_s23  ;;  %276 = vrot.lane.b32.xlu0 %v586_v0, %s546_s23 }
  0x29   : > { %297 = vrot.lane.b32.xlu1 %v590_v1, %s548_s24  ;;  %295 = vrot.lane.b32.xlu0 %v586_v0, %s548_s24 }
  0x2d   : > { %316 = vrot.lane.b32.xlu1 %v590_v1, %s549_s25  ;;  %314 = vrot.lane.b32.xlu0 %v586_v0, %s549_s25 }
  0x83   : > { %v199_v10 = vpop.permute.xlu1 %198  ;;  %v178_v11 = vpop.permute.xlu0 %177 }
  0x87   : > { %v201_v16 = vpop.permute.xlu1 %200  ;;  %v180_v17 = vpop.permute.xlu0 %179 }
  0x88   : > { %v203_v20 = vsel %vm202_vm0, %v199_v10, %v201_v16  ;;  %v204_v21 = vsel %vm202_vm0, %v201_v16, %v199_v10  ;;  %v184_v22 = vsel %vm183_vm1, %v178_v11, %v180_v17  ;;  %v185_v23 = vsel %vm183_vm1, %v180_v17, %v178_v11  ;;  %v494_v16 = vld [vmem:[%s669_s1 + $0x18] ss:$0 sm:$0xff]  ;;  %v493_v17 = vld [vmem:[%s669_s1 + $0x10] ss:$0 sm:$0xff] }
  0x89   : > { %v213_v24 = vmul.f32 %v208_v12, %v204_v21  ;;  %v194_v25 = vmul.f32 %v189_v13, %v185_v23  ;;  %v195_v26 = vmul.f32 %v193_v14, %v184_v22  ;;  %v214_v27 = vmul.f32 %v212_v15, %v203_v20  ;;  %v333_v23 = vld [vmem:[%s668_s0] sm:$0xff] }
  0x8b   : > { %v220_v28 = vpop.permute.xlu1 %219  ;;  %v218_v29 = vpop.permute.xlu0 %217  ;;  %v500_v30 = vpack.c.bf16 %v214_v27, %v195_v26  ;;  %v502_v31 = vpack.c.bf16 %v213_v24, %v194_v25 }
  0x8c   : > { %v222_v37 = vsel %vm221_vm2, %v218_v29, %v220_v28  ;;  %v223_v38 = vsel %vm221_vm2, %v220_v28, %v218_v29 }
  0x8d   : > { %501 = vmatprep.subr.bf16.mxu0 %v500_v30  ;;  %v232_v45 = vmul.f32 %v227_v33, %v223_v38  ;;  %v233_v46 = vmul.f32 %v231_v34, %v222_v37 }
  0x8e   : > { %503 = vmatpush1.bf16.msra.mxu0 %v502_v31 }
  0x8f   : > { %v239_v39 = vpop.permute.xlu1 %238  ;;  %v237_v40 = vpop.permute.xlu0 %236 }
  0x90   : > { %v241_v41 = vsel %vm240_vm3, %v237_v40, %v239_v39  ;;  %v242_v42 = vsel %vm240_vm3, %v239_v39, %v237_v40 }
  0x91   : > { %v251_v47 = vmul.f32 %v246_v35, %v242_v42  ;;  %v252_v48 = vmul.f32 %v250_v36, %v241_v41 }
  0x93   : > { %v260_v49 = vpop.permute.xlu1 %259  ;;  %v258_v50 = vpop.permute.xlu0 %257  ;;  %v504_v51 = vpack.c.bf16 %v252_v48, %v233_v46  ;;  %v506_v52 = vpack.c.bf16 %v251_v47, %v232_v45 }
  0x94   : > { %v262_v53 = vsel %vm261_vm4, %v258_v50, %v260_v49  ;;  %v263_v54 = vsel %vm261_vm4, %v260_v49, %v258_v50 }
  0x95   : > { %v272_v56 = vmul.f32 %v267_v43, %v262_v53  ;;  %v273_v57 = vmul.f32 %v271_v44, %v263_v54  ;;  %505 = vmatprep.subr.bf16.mxu0 %v504_v51 }
  0x96   : > { %507 = vmatpush1.bf16.msra.mxu0 %v506_v52 }
  0x97   : > { %v279_v59 = vpop.permute.xlu1 %278  ;;  %v277_v60 = vpop.permute.xlu0 %276  ;;  %v508_v61 = vpack.c.bf16 %v273_v57, %v590_v1  ;;  %v510_v62 = vpack.c.bf16 %v272_v56, %v586_v0 }
  0x98   : > { %v281_v6 = vsel %vm280_vm5, %v277_v60, %v279_v59  ;;  %v282_v7 = vsel %vm280_vm5, %v279_v59, %v277_v60 }
  0x99   : > { %509 = vmatprep.subr.bf16.mxu0 %v508_v61  ;;  %v291_v0 = vmul.f32 %v286_v63, %v281_v6  ;;  %v292_v13 = vmul.f32 %v290_v2, %v282_v7 }
  0x9a   : > { %511 = vmatpush1.bf16.msra.mxu0 %v510_v62 }
  0x9b   : > { %v298_v10 = vpop.permute.xlu1 %297  ;;  %v296_v11 = vpop.permute.xlu0 %295 }
  0x9c   : > { %v300_v12 = vsel %vm299_vm6, %v296_v11, %v298_v10  ;;  %v301_v1 = vsel %vm299_vm6, %v298_v10, %v296_v11 }
  0x9d   : > { %v310_v14 = vmul.f32 %v305_v3, %v300_v12  ;;  %v311_v15 = vmul.f32 %v309_v4, %v301_v1 }
  0x9f   : > { %v317_v8 = vpop.permute.xlu1 %316  ;;  %v512_v9 = vpack.c.bf16 %v311_v15, %v292_v13  ;;  %v315_v18 = vpop.permute.xlu0 %314  ;;  %v514_v19 = vpack.c.bf16 %v310_v14, %v291_v0 }
  0xa0   : > { %v319_v20 = vsel %vm318_vm7, %v315_v18, %v317_v8  ;;  %v320_v21 = vsel %vm318_vm7, %v317_v8, %v315_v18 }
  0xa1   : > { %513 = vmatprep.subr.bf16.mxu0 %v512_v9  ;;  %v330_v5 = vmul.f32 %v494_v16, %v320_v21  ;;  %v329_v22 = vmul.f32 %v493_v17, %v319_v20 }
  0xa2   : > { %515 = vmatpush1.bf16.msra.mxu0 %v514_v19 }
  0xa3   : > { %372 = vmatprep.subr.mxu0 %v330_v5 }
  0xa6   : > { %373 = vmatpush1.msra.mxu0 %v329_v22 }
  0xa7   : > { %495 = vmatmul.mubr.msk.f32.vlgmr.msra.gmra.mrb[0].mxu0 %vm352_vm8, %v333_v23 }
 0x17a   : > { %v422_v24 = vpop.f32.mrb[0].mxu0 }
 0x17b   : > { %427 = vst [vmem:[%s170_s11] sm:$0xff] %v422_v24  ;;  %v424_v25 = vpop.f32.mrb[1].mxu0 }
 0x17c   : > { %428 = vst [vmem:[%s170_s11 + $0x8] sm:$0xff] %v424_v25 }
 0x17d PF: > { %s13_s12 = sadd.s32 1, %s539_s12  }
 0x17e   : > { %p10_p4 = scmp.ge.s32.totalorder %s13_s12, 4  }
 0x180   :  { %12 = sbr.rel (!%p10_p4) target bundleno = 1 (0x1), region = 62 }

</bundles_post_ra>
